<compile_context>
chip_gen: v6e
topology: v6e:2x2x1
jax: 0.10.0
libtpu: 0.0.40
codegen_flags: <defaults>
</compile_context>

<pallas_src>
import jax
import jax.numpy as jnp
from jax.experimental import pallas as pl
from jax.experimental.pallas import tpu as pltpu


def _copy_tables_kernel(user_hbm, item_hbm, user_out, item_out,
                        user_sem, item_sem):
    """Direct HBM->HBM DMA copy of both embedding tables, overlapped."""
    user_cp = pltpu.make_async_copy(user_hbm, user_out, user_sem)
    item_cp = pltpu.make_async_copy(item_hbm, item_out, item_sem)
    # Issue both DMAs before waiting so the two table streams overlap and the
    # copy runs at HBM roofline with a single kernel invocation.
    user_cp.start()
    item_cp.start()
    user_cp.wait()
    item_cp.wait()


def _materialize_tables(user_weight: jax.Array, item_weight: jax.Array):
    """One pallas_call that copies both tables via raw HBM->HBM DMA."""
    bytes_accessed = 2 * (user_weight.size * user_weight.dtype.itemsize +
                          item_weight.size * item_weight.dtype.itemsize)
    return pl.pallas_call(
        _copy_tables_kernel,
        out_shape=(
            jax.ShapeDtypeStruct(user_weight.shape, user_weight.dtype),
            jax.ShapeDtypeStruct(item_weight.shape, item_weight.dtype),
        ),
        in_specs=[
            pl.BlockSpec(memory_space=pl.ANY),   # user table stays in HBM
            pl.BlockSpec(memory_space=pl.ANY),   # item table stays in HBM
        ],
        out_specs=(
            pl.BlockSpec(memory_space=pl.ANY),
            pl.BlockSpec(memory_space=pl.ANY),
        ),
        scratch_shapes=[
            pltpu.SemaphoreType.DMA(()),         # user copy completion
            pltpu.SemaphoreType.DMA(()),         # item copy completion
        ],
        cost_estimate=pl.CostEstimate(
            flops=0,
            transcendentals=0,
            bytes_accessed=bytes_accessed),
    )(user_weight, item_weight)


def mf_forward(user_weight: jax.Array, item_weight: jax.Array, adj=None,
               build_item_graph: bool = False, *, materialize: bool = True):
    """Pallas equivalent of MF.forward(adj, build_item_graph).

    `adj` and `build_item_graph` are accepted for signature parity but, as in
    the PyTorch module, they are unused.  With materialize=False the identity
    is returned directly (zero HBM traffic — the recommended production path;
    materialize=True costs 2x the table bytes of HBM traffic per call but
    exercises the Pallas DMA kernel).
    """
    del adj, build_item_graph  # unused, matches reference semantics
    if not materialize:
        return user_weight, item_weight
    return _materialize_tables(user_weight, item_weight)


def xavier_uniform(key, shape, dtype=jnp.float32):
    """nn.init.xavier_uniform_ for a 2D weight: U(-a, a), a = sqrt(6/(fan_in+fan_out))."""
    fan_out, fan_in = shape  # nn.Embedding weight: (num_embeddings, embedding_dim)
    bound = (6.0 / (fan_in + fan_out)) ** 0.5
    return jax.random.uniform(key, shape, dtype, minval=-bound, maxval=bound)


class MFPallas:
    def __init__(self, n_users, n_items, embedding_dim, weight_size=None,
                 dropout_list=None, image_feats=None, text_feats=None, *,
                 key=jax.random.PRNGKey(0)):
        self.n_users = n_users
        self.n_items = n_items
        self.embedding_dim = embedding_dim
        ku, ki = jax.random.split(key)
        self.user_embedding_weight = xavier_uniform(ku, (n_users, embedding_dim))
        self.item_embedding_weight = xavier_uniform(ki, (n_items, embedding_dim))

    def __call__(self, adj=None, build_item_graph=False, *, materialize=True):
        return mf_forward(self.user_embedding_weight,
                          self.item_embedding_weight,
                          adj, build_item_graph,
                          materialize=materialize)


if __name__ == "__main__":
    key = jax.random.PRNGKey(0)

    n_users, n_items, embedding_dim = 8, 16, 32
    model = MFPallas(n_users, n_items, embedding_dim,
                     weight_size=[64, 64], dropout_list=[0.1, 0.1], key=key)

    # `adj` is unused by the forward pass; build a dummy one for signature parity.
    adj = jnp.zeros((n_users, n_items), dtype=jnp.float32)

    # Pallas kernel path: single call, two overlapped HBM->HBM DMAs.
    user_out, item_out = model(adj, build_item_graph=True)
    jax.block_until_ready((user_out, item_out))

    assert user_out.shape == (n_users, embedding_dim)
    assert item_out.shape == (n_items, embedding_dim)
    assert user_out.dtype == model.user_embedding_weight.dtype
    assert item_out.dtype == model.item_embedding_weight.dtype
    assert jnp.array_equal(user_out, model.user_embedding_weight)
    assert jnp.array_equal(item_out, model.item_embedding_weight)

    # Zero-copy identity path (fastest correct option per perf review).
    u2, i2 = model(adj, build_item_graph=False, materialize=False)
    assert u2 is model.user_embedding_weight
    assert i2 is model.item_embedding_weight

    print("KERNEL_OK")
</pallas_src>

<mosaic_0001>
module attributes {stable_mosaic.version = 11 : i64} {
  func.func @_copy_tables_kernel(%arg0: memref<8x32xf32, #tpu.memory_space<any>>, %arg1: memref<16x32xf32, #tpu.memory_space<any>>, %arg2: memref<8x32xf32, #tpu.memory_space<any>>, %arg3: memref<16x32xf32, #tpu.memory_space<any>>, %arg4: memref<!tpu.dma_semaphore, #tpu.memory_space<semaphore_mem>>, %arg5: memref<!tpu.dma_semaphore, #tpu.memory_space<semaphore_mem>>) attributes {dimension_semantics = [], scalar_prefetch = 0 : i64, scratch_operands = 2 : i64, tpu.core_type = #tpu.core_type<tc>} {
    tpu.enqueue_dma source(%arg0 : memref<8x32xf32, #tpu.memory_space<any>>) target(%arg2 : memref<8x32xf32, #tpu.memory_space<any>>) target_semaphore(%arg4 : memref<!tpu.dma_semaphore, #tpu.memory_space<semaphore_mem>>)
    tpu.enqueue_dma source(%arg1 : memref<16x32xf32, #tpu.memory_space<any>>) target(%arg3 : memref<16x32xf32, #tpu.memory_space<any>>) target_semaphore(%arg5 : memref<!tpu.dma_semaphore, #tpu.memory_space<semaphore_mem>>)
    tpu.wait_dma2 semaphore(%arg4 : memref<!tpu.dma_semaphore, #tpu.memory_space<semaphore_mem>>) src(%arg0 : memref<8x32xf32, #tpu.memory_space<any>>) dst(%arg2 : memref<8x32xf32, #tpu.memory_space<any>>)
    tpu.wait_dma2 semaphore(%arg5 : memref<!tpu.dma_semaphore, #tpu.memory_space<semaphore_mem>>) src(%arg1 : memref<16x32xf32, #tpu.memory_space<any>>) dst(%arg3 : memref<16x32xf32, #tpu.memory_space<any>>)
    return
  }
}

</mosaic_0001>

<bundles_post_ra>
// kernel: tpu_custom_call.1
= control target key start
LH: loop header
LB: loop body
LE: loop exit
PB: predicated region body
PF: predicated region fallthrough
CT: control target
= control target key end

     0   :  { %s51_s12 = smov [#allocation2]   ;;  %s52_s13 = smov 131072   ;;  %s87_s0 = inlined_call_operand.hbm [shape: f32[8,32], index: 0, kind: input, shape index: {}]   ;;  %s88_s2 = inlined_call_operand.hbm [shape: f32[8,32], index: 2, kind: output, shape index: {0}]   ;;  %s89_s1 = inlined_call_operand.hbm [shape: f32[16,32], index: 1, kind: input, shape index: {}]   ;;  %s90_s3 = inlined_call_operand.hbm [shape: f32[16,32], index: 3, kind: output, shape index: {1}]  }
   0x1   :  { %s53_s14 = smov 0   ;;  %s54_s19 = smov [#allocation3]  }
   0x2   :  { %15 = dma.general %s87_s0, 128, %s88_s2, %s51_s12, %s52_s13, [#allocation5], %s53_s14, 0  }
   0x3   :  { %22 = dma.general %s89_s1, 256, %s90_s3, %s54_s19, %s52_s13, [#allocation7], %s53_s14, 0  }
   0x4   :  { %47 = dma.done.wait [#allocation2], 128 }
   0x5   :  { %48 = vsyncadd [#allocation2], 4294967168 }
   0x6   :  { %49 = dma.done.wait [#allocation3], 256 }
   0x7   :  { %50 = vsyncadd [#allocation3], 4294967040 }
   0x8   :  { %29 = vsyncmov [#allocation2] }
   0xb   :  { %s30_s24 = vpop.sfrf %29 }
   0xc   :  { %p41_p0 = scmp.ne.s32.totalorder %s30_s24, 0 }
   0xe   :  { %34 = shalt.err (%p41_p0)  }
   0xf   :  { %35 = vsyncmov [#allocation3] }
  0x12   :  { %s36_s25 = vpop.sfrf %35 }
  0x13   :  { %p42_p1 = scmp.ne.s32.totalorder %s36_s25, 0 }
  0x15   :  { %40 = shalt.err (%p42_p1)  }

</bundles_post_ra>
